<compile_context>
chip_gen: v5e
topology: v5e:2x2
jax: 0.10.0
libtpu: 0.0.40
codegen_flags: <defaults>
</compile_context>

<pallas_src>
import jax
import jax.numpy as jnp
from jax.experimental import pallas as pl
from jax.experimental.pallas import tpu as pltpu


# ----------------------------------------------------------------------------
# Fused kernel body: computes e_dot, e_general, e_concat for one pair.
# Shared by the grid-less single-pair call and the grid=(P,) batched call.
# ----------------------------------------------------------------------------
def _goscore_fused_kernel(deepseq_ref, govec_ref, w_gen_ref, params_ref, out_ref):
    ds = deepseq_ref[...]                       # (B, S) f32
    gv = govec_ref[...]                         # (B, G) f32
    slab = params_ref[...]                      # (4, W) f32 static-param slab
    S = ds.shape[1]
    G = gv.shape[1]

    # method == 'dot':  dot(deepseq.flatten(), deepseq.flatten())
    e_dot = jnp.sum(ds * ds)

    # method == 'general':  energy = Linear(govec); dot(deepseq, energy)
    # bf16 operands, f32 accumulation -> single-pass MXU; cast stays in-kernel.
    b_gen = slab[0:1, :S]                       # (1, S)
    energy = jnp.dot(gv.astype(jnp.bfloat16), w_gen_ref[...],
                     preferred_element_type=jnp.float32) + b_gen
    e_gen = jnp.sum(ds * energy)

    # method == 'concat' (torch.dot(v, .) semantics -> B must be 1; row 0 used):
    #   v . (cat([ds0, gv0]) @ W_cat + b_cat)
    # = ds0 . (W_seq @ v^T) + gv0 . (W_go @ v^T) + v . b_cat
    # W* @ v^T and v.b_cat are pre-contracted into the slab -> pure VPU here.
    p_seq = slab[1:2, :S]                       # (1, S)
    p_go = slab[2:3, :G]                        # (1, G)
    e_cat = (jnp.sum(ds[0:1, :] * p_seq)
             + jnp.sum(gv[0:1, :] * p_go)
             + jnp.sum(slab[3:4, :]))           # c_cat in lane 0, zeros elsewhere

    # Pack the three scalars into one lane-dense 128-wide row, broadcast over
    # the 8 sublanes of the output tile (fully unmasked vst writeback).
    lane = jax.lax.broadcasted_iota(jnp.int32, (1, 128), 1)
    row = jnp.where(lane == 0, e_dot,
          jnp.where(lane == 1, e_gen,
          jnp.where(lane == 2, e_cat, jnp.float32(0.0))))
    out_ref[...] = jnp.broadcast_to(row, out_ref.shape)


# ----------------------------------------------------------------------------
# Single-pair wrapper: module-equivalent forward (one launch, 4 operands).
# ----------------------------------------------------------------------------
def go_score_fused(deepseq, govec, w_gen_bf16, param_slab):
    vmem = pl.BlockSpec(memory_space=pltpu.MemorySpace.VMEM)
    out = pl.pallas_call(
        _goscore_fused_kernel,
        in_specs=[vmem, vmem, vmem, vmem],
        out_specs=pl.BlockSpec(memory_space=pltpu.MemorySpace.VMEM),
        out_shape=jax.ShapeDtypeStruct((8, 128), jnp.float32),
    )(deepseq, govec, w_gen_bf16, param_slab)
    return out[0, 0], out[0, 1], out[0, 2]


# ----------------------------------------------------------------------------
# Batched wrapper: P (deepseq, govec) pairs in one call, grid=(P,) "parallel"
# so both v7x TensorCores work and launch/DMA fixed cost is amortized.
# ----------------------------------------------------------------------------
def go_score_fused_batched(deepseq_b, govec_b, w_gen_bf16, param_slab):
    P, B, S = deepseq_b.shape
    G = govec_b.shape[-1]
    W = param_slab.shape[-1]
    grid_spec = pltpu.PrefetchScalarGridSpec(
        num_scalar_prefetch=0,
        grid=(P,),
        in_specs=[
            pl.BlockSpec((None, B, S), lambda p: (p, 0, 0)),   # per-pair deepseq
            pl.BlockSpec((None, B, G), lambda p: (p, 0, 0)),   # per-pair govec
            pl.BlockSpec((G, S), lambda p: (0, 0)),            # shared weights
            pl.BlockSpec((4, W), lambda p: (0, 0)),            # shared param slab
        ],
        out_specs=pl.BlockSpec((None, 8, 128), lambda p: (p, 0, 0)),
    )
    out = pl.pallas_call(
        _goscore_fused_kernel,
        grid_spec=grid_spec,
        out_shape=jax.ShapeDtypeStruct((P, 8, 128), jnp.float32),
        compiler_params=pltpu.CompilerParams(dimension_semantics=("parallel",)),
    )(deepseq_b, govec_b, w_gen_bf16, param_slab)
    return out[:, 0, 0], out[:, 0, 1], out[:, 0, 2]


# ----------------------------------------------------------------------------
# One-time static parameter preprocessing (module-init time).
# w_gen must already be transposed to (in, out) = (G, S); real PyTorch Linear
# weights are (out, in) and must be transposed before calling this.
# ----------------------------------------------------------------------------
def prepare_params(w_gen, b_gen, w_seq, w_go, b_cat, v):
    G, S = w_gen.shape
    W = max(128, ((max(S, G) + 127) // 128) * 128)

    w_gen_bf16 = w_gen.astype(jnp.bfloat16)      # (G, S)
    p_seq = (w_seq @ v.T).reshape(-1)            # (S,)  = W_seq @ v^T
    p_go = (w_go @ v.T).reshape(-1)              # (G,)  = W_go  @ v^T
    c_cat = jnp.sum(v * b_cat)                   # scalar = v . b_cat

    slab = jnp.zeros((4, W), jnp.float32)
    slab = slab.at[0, :S].set(b_gen.reshape(-1))
    slab = slab.at[1, :S].set(p_seq)
    slab = slab.at[2, :G].set(p_go)
    slab = slab.at[3, 0].set(c_cat)
    return w_gen_bf16, slab


# ----------------------------------------------------------------------------
# main
# ----------------------------------------------------------------------------
if __name__ == "__main__":
    key = jax.random.PRNGKey(0)
    k = jax.random.split(key, 8)

    B, size_seq, size_go = 8, 128, 64

    # Inputs
    deepseq = jax.random.normal(k[0], (B, size_seq), dtype=jnp.float32)
    govec = jax.random.normal(k[1], (B, size_go), dtype=jnp.float32)

    # 'general': nn.Linear(size_go, size_seq) -> weight pre-transposed to (G, S)
    bound_g = 1.0 / jnp.sqrt(size_go)
    w_gen = jax.random.uniform(k[2], (size_go, size_seq), jnp.float32, -bound_g, bound_g)
    b_gen = jax.random.uniform(k[3], (1, size_seq), jnp.float32, -bound_g, bound_g)

    # 'concat': nn.Linear(size_seq+size_go, size_seq) split into W_seq / W_go,
    # plus v: (1, size_seq)
    bound_c = 1.0 / jnp.sqrt(size_seq + size_go)
    w_seq = jax.random.uniform(k[4], (size_seq, size_seq), jnp.float32, -bound_c, bound_c)
    w_go = jax.random.uniform(k[5], (size_go, size_seq), jnp.float32, -bound_c, bound_c)
    b_cat = jax.random.uniform(k[6], (1, size_seq), jnp.float32, -bound_c, bound_c)
    v = jax.random.normal(k[7], (1, size_seq), dtype=jnp.float32)

    w_gen_bf16, slab = prepare_params(w_gen, b_gen, w_seq, w_go, b_cat, v)
    w_cat_full = jnp.concatenate([w_seq, w_go], axis=0)

    # ---- single-pair (module-equivalent) path -------------------------------
    fused = jax.jit(go_score_fused)
    e_dot, e_gen, e_cat = fused(deepseq, govec, w_gen_bf16, slab)
    jax.block_until_ready((e_dot, e_gen, e_cat))

    # pure-JAX references
    ref_dot = jnp.sum(deepseq * deepseq)
    energy_ref = jnp.dot(govec.astype(jnp.bfloat16), w_gen_bf16,
                         preferred_element_type=jnp.float32) + b_gen
    ref_gen = jnp.sum(deepseq * energy_ref)
    cat = jnp.concatenate([deepseq[:1], govec[:1]], axis=1)
    ref_cat = jnp.dot(v.reshape(-1), (cat @ w_cat_full + b_cat).reshape(-1))

    assert jnp.allclose(e_dot, ref_dot, rtol=1e-3, atol=1e-3)
    assert jnp.allclose(e_gen, ref_gen, rtol=1e-3, atol=1e-2)
    assert jnp.allclose(e_cat, ref_cat, rtol=1e-3, atol=1e-3)

    # ---- batched path (P pairs, parallel grid) ------------------------------
    P = 4
    kb = jax.random.split(jax.random.PRNGKey(1), 2)
    deepseq_b = jax.random.normal(kb[0], (P, B, size_seq), dtype=jnp.float32)
    govec_b = jax.random.normal(kb[1], (P, B, size_go), dtype=jnp.float32)

    fused_b = jax.jit(go_score_fused_batched)
    bd, bg, bc = fused_b(deepseq_b, govec_b, w_gen_bf16, slab)
    jax.block_until_ready((bd, bg, bc))

    for p in range(P):
        rd = jnp.sum(deepseq_b[p] * deepseq_b[p])
        energy_p = jnp.dot(govec_b[p].astype(jnp.bfloat16), w_gen_bf16,
                           preferred_element_type=jnp.float32) + b_gen
        rg = jnp.sum(deepseq_b[p] * energy_p)
        catp = jnp.concatenate([deepseq_b[p, :1], govec_b[p, :1]], axis=1)
        rc = jnp.dot(v.reshape(-1), (catp @ w_cat_full + b_cat).reshape(-1))
        assert jnp.allclose(bd[p], rd, rtol=1e-3, atol=1e-3)
        assert jnp.allclose(bg[p], rg, rtol=1e-3, atol=1e-2)
        assert jnp.allclose(bc[p], rc, rtol=1e-3, atol=1e-3)

    # TODO(synk): 'concat' branch assumes B == 1 (torch.dot semantics); rows
    # 1..B-1 of deepseq/govec are ignored for that method, matching the spec.
    print("KERNEL_OK")
</pallas_src>

<mosaic_0001>
module attributes {stable_mosaic.version = 11 : i64} {
  func.func @_goscore_fused_kernel(%arg0: memref<8x128xf32, #tpu.memory_space<vmem>>, %arg1: memref<8x64xf32, #tpu.memory_space<vmem>>, %arg2: memref<64x128xbf16, #tpu.memory_space<vmem>>, %arg3: memref<4x128xf32, #tpu.memory_space<vmem>>, %arg4: memref<8x128xf32, #tpu.memory_space<vmem>>) attributes {dimension_semantics = [], scalar_prefetch = 0 : i64, scratch_operands = 0 : i64, tpu.core_type = #tpu.core_type<tc>} {
    %c0 = arith.constant 0 : index
    %c0_0 = arith.constant 0 : index
    %0 = vector.load %arg0[%c0, %c0_0] : memref<8x128xf32, #tpu.memory_space<vmem>>, vector<8x128xf32>
    %c0_1 = arith.constant 0 : index
    %c0_2 = arith.constant 0 : index
    %1 = vector.load %arg1[%c0_1, %c0_2] : memref<8x64xf32, #tpu.memory_space<vmem>>, vector<8x64xf32>
    %c0_3 = arith.constant 0 : index
    %c0_4 = arith.constant 0 : index
    %2 = vector.load %arg3[%c0_3, %c0_4] : memref<4x128xf32, #tpu.memory_space<vmem>>, vector<4x128xf32>
    %3 = arith.mulf %0, %0 : vector<8x128xf32>
    %4 = vector.shape_cast %3 : vector<8x128xf32> to vector<1x8x128xf32>
    %cst = arith.constant dense<0.000000e+00> : vector<1xf32>
    %5 = vector.multi_reduction <add>, %4, %cst [1, 2] : vector<1x8x128xf32> to vector<1xf32>
    %6 = vector.shape_cast %5 : vector<1xf32> to vector<1x1x1xf32>
    %7 = vector.extract %6[0, 0, 0] : f32 from vector<1x1x1xf32>
    %8 = vector.extract_strided_slice %2 {offsets = [0, 0], sizes = [1, 128], strides = [1, 1]} : vector<4x128xf32> to vector<1x128xf32>
    %9 = arith.truncf %1 : vector<8x64xf32> to vector<8x64xbf16>
    %c0_5 = arith.constant 0 : index
    %c0_6 = arith.constant 0 : index
    %10 = vector.load %arg2[%c0_5, %c0_6] : memref<64x128xbf16, #tpu.memory_space<vmem>>, vector<64x128xbf16>
    %cst_7 = arith.constant dense<0.000000e+00> : vector<8x128xf32>
    %11 = tpu.matmul %9, %10, %cst_7 {dimension_numbers = #tpu.dot_dimension_numbers<[1], [0], [0], [1], [0, 0, 1, 1], [], []>} : vector<8x64xbf16>, vector<64x128xbf16>, vector<8x128xf32> -> vector<8x128xf32>
    %12 = vector.broadcast %8 : vector<1x128xf32> to vector<8x128xf32>
    %13 = arith.addf %11, %12 : vector<8x128xf32>
    %14 = arith.mulf %0, %13 : vector<8x128xf32>
    %15 = vector.shape_cast %14 : vector<8x128xf32> to vector<1x8x128xf32>
    %cst_8 = arith.constant dense<0.000000e+00> : vector<1xf32>
    %16 = vector.multi_reduction <add>, %15, %cst_8 [1, 2] : vector<1x8x128xf32> to vector<1xf32>
    %17 = vector.shape_cast %16 : vector<1xf32> to vector<1x1x1xf32>
    %18 = vector.extract %17[0, 0, 0] : f32 from vector<1x1x1xf32>
    %19 = vector.extract_strided_slice %2 {offsets = [1, 0], sizes = [1, 128], strides = [1, 1]} : vector<4x128xf32> to vector<1x128xf32>
    %20 = vector.extract_strided_slice %2 {offsets = [2, 0], sizes = [1, 64], strides = [1, 1]} : vector<4x128xf32> to vector<1x64xf32>
    %21 = vector.extract_strided_slice %0 {offsets = [0, 0], sizes = [1, 128], strides = [1, 1]} : vector<8x128xf32> to vector<1x128xf32>
    %22 = arith.mulf %21, %19 : vector<1x128xf32>
    %23 = vector.shape_cast %22 : vector<1x128xf32> to vector<1x1x128xf32>
    %cst_9 = arith.constant dense<0.000000e+00> : vector<1xf32>
    %24 = vector.multi_reduction <add>, %23, %cst_9 [1, 2] : vector<1x1x128xf32> to vector<1xf32>
    %25 = vector.shape_cast %24 : vector<1xf32> to vector<1x1x1xf32>
    %26 = vector.extract %25[0, 0, 0] : f32 from vector<1x1x1xf32>
    %27 = vector.extract_strided_slice %1 {offsets = [0, 0], sizes = [1, 64], strides = [1, 1]} : vector<8x64xf32> to vector<1x64xf32>
    %28 = arith.mulf %27, %20 : vector<1x64xf32>
    %29 = vector.shape_cast %28 : vector<1x64xf32> to vector<1x1x64xf32>
    %cst_10 = arith.constant dense<0.000000e+00> : vector<1xf32>
    %30 = vector.multi_reduction <add>, %29, %cst_10 [1, 2] : vector<1x1x64xf32> to vector<1xf32>
    %31 = vector.shape_cast %30 : vector<1xf32> to vector<1x1x1xf32>
    %32 = vector.extract %31[0, 0, 0] : f32 from vector<1x1x1xf32>
    %33 = arith.addf %26, %32 : f32
    %34 = vector.extract_strided_slice %2 {offsets = [3, 0], sizes = [1, 128], strides = [1, 1]} : vector<4x128xf32> to vector<1x128xf32>
    %35 = vector.shape_cast %34 : vector<1x128xf32> to vector<1x1x128xf32>
    %cst_11 = arith.constant dense<0.000000e+00> : vector<1xf32>
    %36 = vector.multi_reduction <add>, %35, %cst_11 [1, 2] : vector<1x1x128xf32> to vector<1xf32>
    %37 = vector.shape_cast %36 : vector<1xf32> to vector<1x1x1xf32>
    %38 = vector.extract %37[0, 0, 0] : f32 from vector<1x1x1xf32>
    %39 = arith.addf %33, %38 : f32
    %40 = tpu.iota {dimensions = array<i32: 1>} : vector<1x128xi32>
    %c0_i32 = arith.constant 0 : i32
    %41 = vector.broadcast %c0_i32 : i32 to vector<1x128xi32>
    %42 = arith.cmpi eq, %40, %41 : vector<1x128xi32>
    %c1_i32 = arith.constant 1 : i32
    %43 = vector.broadcast %c1_i32 : i32 to vector<1x128xi32>
    %44 = arith.cmpi eq, %40, %43 : vector<1x128xi32>
    %c2_i32 = arith.constant 2 : i32
    %45 = vector.broadcast %c2_i32 : i32 to vector<1x128xi32>
    %46 = arith.cmpi eq, %40, %45 : vector<1x128xi32>
    %cst_12 = arith.constant 0.000000e+00 : f32
    %47 = vector.broadcast %39 : f32 to vector<1x128xf32>
    %48 = vector.broadcast %cst_12 : f32 to vector<1x128xf32>
    %49 = arith.select %46, %47, %48 : vector<1x128xi1>, vector<1x128xf32>
    %50 = vector.broadcast %18 : f32 to vector<1x128xf32>
    %51 = arith.select %44, %50, %49 : vector<1x128xi1>, vector<1x128xf32>
    %52 = vector.broadcast %7 : f32 to vector<1x128xf32>
    %53 = arith.select %42, %52, %51 : vector<1x128xi1>, vector<1x128xf32>
    %54 = vector.shape_cast %53 : vector<1x128xf32> to vector<1x128xf32>
    %55 = vector.broadcast %54 : vector<1x128xf32> to vector<8x128xf32>
    %c0_13 = arith.constant 0 : index
    %c0_14 = arith.constant 0 : index
    %56 = vector.load %arg4[%c0_13, %c0_14] : memref<8x128xf32, #tpu.memory_space<vmem>>, vector<8x128xf32>
    tpu.vector_store %arg4[%c0_13, %c0_14], %55 {strides = array<i32>} : memref<8x128xf32, #tpu.memory_space<vmem>>, vector<8x128xf32>,
    return
  }
}

</mosaic_0001>

<bundles_post_ra>
// kernel: go_score_fused.1
= control target key start
LH: loop header
LB: loop body
LE: loop exit
PB: predicated region body
PF: predicated region fallthrough
CT: control target
= control target key end

     0   :  { %9 = vsyncpa [#allocation3], 0  ;;  %s398_s0 = inlined_call_operand.hbm [shape: f32[8,128], index: 0, kind: input, shape index: {}]   ;;  %s399_s1 = inlined_call_operand.hbm [shape: f32[8,64], index: 1, kind: input, shape index: {}]   ;;  %s400_s2 = inlined_call_operand.hbm [shape: bf16[64,128], index: 2, kind: input, shape index: {}]   ;;  %s401_s3 = inlined_call_operand.hbm [shape: f32[4,128], index: 3, kind: input, shape index: {}]   ;;  %s402_s4 = inlined_call_operand.vmem [shape: f32[8,128], index: 4, kind: output, shape index: {}]  }
   0x1   :  { %10 = vsyncpa [#allocation5], 0  ;;  %s28_s17 = sshll.u32 %s399_s1, 4  ;;  %s29_s17 = int_to_ptr.hbm [resolvable:$true] %s28_s17 }
   0x2   :  { %11 = vsyncpa [#allocation8], 0  ;;  %s350_s18 = smov [#allocation4]   ;;  %s17_s22 = sshll.u32 %s398_s0, 4  ;;  %s18_s22 = int_to_ptr.hbm [resolvable:$true] %s17_s22 }
   0x3   :  { %s30_s19 = sshll.u32 %s350_s18, 4  ;;  %s351_s23 = smov [#allocation2]   ;;  %s31_s19 = int_to_ptr.vmem [resolvable:$true] %s30_s19 }
   0x4   :  { %33 = dma.hbm_to_vmem [thread:$0]  %s29_s17, 128, %s31_s19, [#allocation5]  }
   0x5   :  { %s19_s24 = sshll.u32 %s351_s23, 4  ;;  %s38_s27 = sshll.u32 %s400_s2, 4  ;;  %s20_s24 = int_to_ptr.vmem [resolvable:$true] %s19_s24  ;;  %s39_s27 = int_to_ptr.hbm [resolvable:$true] %s38_s27 }
   0x6   :  { %22 = dma.hbm_to_vmem [thread:$0]  %s18_s22, 128, %s20_s24, [#allocation3]  }
   0x7   :  { %s352_s1 = smov [#allocation6]   ;;  %s52_s5 = sshll.u32 %s401_s3, 4  ;;  %s53_s5 = int_to_ptr.hbm [resolvable:$true] %s52_s5 }
   0x8   :  { %s40_s28 = sshll.u32 %s352_s1, 4  ;;  %s353_s6 = smov 64   ;;  %s41_s28 = int_to_ptr.vmem [resolvable:$true] %s40_s28 }
   0x9   :  { %s354_s0 = smov 4   ;;  %s355_s7 = smov [#allocation7]  }
   0xa   :  { %46 = dma.hbm_to_vmem [thread:$0]  %s39_s27, 512, %s41_s28, [#allocation5], %s353_s6, %s353_s6, %s354_s0  }
   0xb   :  { %s54_s8 = sshll.u32 %s355_s7, 4  ;;  %s55_s8 = int_to_ptr.vmem [resolvable:$true] %s54_s8 }
   0xc   :  { %57 = dma.hbm_to_vmem [thread:$0]  %s53_s5, 64, %s55_s8, [#allocation8]  }
   0xd   :  { %344 = dma.done.wait [#allocation3], 128  }
   0xe   :  { %345 = vsyncadd [#allocation3], 4294967168 }
   0xf   :  { %346 = dma.done.wait [#allocation5], 640  }
  0x10   :  { %347 = vsyncadd [#allocation5], 4294966656 }
  0x11   :  { %348 = dma.done.wait [#allocation8], 64  }
  0x12   :  { %349 = vsyncadd [#allocation8], 4294967232  ;;  %v231_v0 = vld [vmem:[#allocation6 + $0x18] sm:$0xff]  ;;  %v75_v1 = vld [vmem:[#allocation2] sm:$0xff]  ;;  %vm153_vm0 = vcmask 1040384   ;;  %vm167_vm1 = vcmask 516096   ;;  %v192_v57 = vlaneseq }
  0x13   :  { %130 = vmatpush.bf16.msra.mxu0 %v231_v0  ;;  %v230_v2 = vld [vmem:[#allocation6 + $0x10] sm:$0xff]  ;;  %v77_v3 = vld [vmem:[#allocation7] sm:$0xf]  ;;  %v78_v4 = vmul.f32 %v75_v1, %v75_v1  ;;  %v229_v8 = vld [vmem:[#allocation6 + $0x8] sm:$0xff]  ;;  %vm122_vm2 = vcmask 523264  }
  0x14   :  { %v150_v5 = vrot.slane %v77_v3, 1  ;;  %v164_v7 = vrot.slane %v77_v3, 2  ;;  %v76_v10 = vld [vmem:[#allocation4] sm:$0xff]  ;;  %v228_v12 = vld [vmem:[#allocation6] sm:$0xff]  ;;  %v179_v15 = vrot.slane %v77_v3, 3  ;;  %v97_v17 = vperm.slane %v77_v3, 0 }
  0x15   :  { %79 = vadd.xlane.f32.xlu0 %v78_v4  ;;  %v88_v13 = vpack.c.bf16 %v76_v10, %v76_v10  ;;  %v193_v58 = vand.u32 127, %v192_v57 }
  0x16   :  { %v152_v6 = vmul.f32 %v150_v5, %v75_v1  ;;  %v166_v11 = vmul.f32 %v164_v7, %v76_v10  ;;  %v181_v16 = vsel %vm153_vm0, %v179_v15, 0.0 }
  0x17   :  { %131 = vmatpush.bf16.msra.mxu0 %v230_v2  ;;  %182 = vadd.xlane.f32.xlu2 %v181_v16  ;;  %vm196_vm3 = vcmp.eq.s32.totalorder %v193_v58, 2  ;;  %vm195_vm4 = vcmp.eq.s32.totalorder %v193_v58, 1  ;;  %vm194_vm5 = vcmp.eq.s32.totalorder %v193_v58, 0 }
  0x18   :  { %v154_v9 = vsel %vm153_vm0, %v152_v6, 0.0  ;;  %v168_v14 = vsel %vm167_vm1, %v166_v11, 0.0 }
  0x19   :  { %155 = vadd.xlane.f32.xlu1 %v154_v9 }
  0x1b   :  { %132 = vmatpush.bf16.msra.mxu0 %v229_v8 }
  0x1f   :  { %133 = vmatpush.bf16.msra.mxu0 %v228_v12 }
  0x21   :  { %169 = vadd.xlane.f32.xlu1 %v168_v14 }
  0x22   :  { %227 = vmatmul.msk.bf16.vlgmr.msra.gmra.mxu0 %vm122_vm2, %v88_v13 }
  0x88   :  { %v80_v22 = vpop.xlane.xlu0 %79 }
  0x89   :  { %v81_v23 = vrot.slane %v80_v22, 4 }
  0x8a   :  { %v183_v31 = vpop.xlane.xlu2 %182 }
  0x8b   :  { %v82_v24 = vadd.f32 %v81_v23, %v80_v22  ;;  %v184_v34 = vrot.slane %v183_v31, 4 }
  0x8c   :  { %v156_v29 = vpop.xlane.xlu1 %155 }
  0x8d   :  { %v83_v25 = vrot.slane %v82_v24, 2  ;;  %v157_v32 = vrot.slane %v156_v29, 4  ;;  %v185_v37 = vadd.f32 %v184_v34, %v183_v31 }
  0x8f   :  { %v84_v26 = vadd.f32 %v83_v25, %v82_v24  ;;  %v158_v35 = vadd.f32 %v157_v32, %v156_v29  ;;  %v186_v42 = vrot.slane %v185_v37, 2 }
  0x91   :  { %v85_v27 = vrot.slane %v84_v26, 1  ;;  %v159_v38 = vrot.slane %v158_v35, 2  ;;  %v187_v47 = vadd.f32 %v186_v42, %v185_v37 }
  0x93   :  { %v86_v28 = vadd.f32 %v85_v27, %v84_v26  ;;  %v160_v44 = vadd.f32 %v159_v38, %v158_v35  ;;  %v188_v52 = vrot.slane %v187_v47, 1 }
  0x94   :  { %v170_v30 = vpop.xlane.xlu1 %169 }
  0x95   :  { %232 = vpush %v86_v28  ;;  %v171_v33 = vrot.slane %v170_v30, 4  ;;  %v161_v49 = vrot.slane %v160_v44, 1  ;;  %v189_v56 = vadd.f32 %v188_v52, %v187_v47 }
  0x97   :  { %v172_v36 = vadd.f32 %v171_v33, %v170_v30  ;;  %v162_v54 = vadd.f32 %v161_v49, %v160_v44 }
  0x99   :  { %v173_v40 = vrot.slane %v172_v36, 2 }
  0x9b   :  { %v174_v45 = vadd.f32 %v173_v40, %v172_v36 }
  0x9d   :  { %v175_v51 = vrot.slane %v174_v45, 1 }
  0x9f   :  { %v135_v18 = vpop.f32.mrf.mxu0  ;;  %v176_v55 = vadd.f32 %v175_v51, %v174_v45 }
  0xa0   :  { %v136_v19 = vadd.f32 %v135_v18, %v97_v17 }
  0xa2   :  { %v139_v20 = vmul.f32 %v136_v19, %v75_v1 }
  0xa4   :  { %140 = vadd.xlane.f32.xlu0 %v139_v20 }
  0xa7   :  { %v137_v21 = vpop.f32.mrf.mxu0 }
  0xc6   :  { %s233_s2 = spop %232 }
  0xc7   :  { %v201_v62 = vstv %s233_s2 }
 0x117   :  { %v141_v39 = vpop.xlane.xlu0 %140 }
 0x118   :  { %v142_v41 = vrot.slane %v141_v39, 4 }
 0x11a   :  { %v143_v43 = vadd.f32 %v142_v41, %v141_v39 }
 0x11c   :  { %v144_v46 = vrot.slane %v143_v43, 2 }
 0x11e   :  { %v145_v48 = vadd.f32 %v144_v46, %v143_v43 }
 0x120   :  { %v146_v50 = vrot.slane %v145_v48, 1 }
 0x122   :  { %v147_v53 = vadd.f32 %v146_v50, %v145_v48 }
 0x124   :  { %234 = vpush %v147_v53 }
 0x125   :  { %236 = vpush %v162_v54 }
 0x126   :  { %238 = vpush %v176_v55 }
 0x127   :  { %240 = vpush %v189_v56 }
 0x155   :  { %s235_s3 = spop %234 }
 0x156   :  { %s237_s9 = spop %236  ;;  %v199_v60 = vstv %s235_s3 }
 0x157   :  { %s239_s10 = spop %238 }
 0x158   :  { %s178_s11 = sadd.f32 %s239_s10, %s237_s9  ;;  %s241_s12 = spop %240 }
 0x15a   :  { %s191_s13 = sadd.f32 %s241_s12, %s178_s11 }
 0x15c   :  { %v197_v59 = vstv %s191_s13 }
 0x15d   :  { %v198_v61 = vsel %vm196_vm3, %v197_v59, 0.0 }
 0x15e   :  { %v200_v63 = vsel %vm195_vm4, %v199_v60, %v198_v61 }
 0x15f   :  { %v202_v0 = vsel %vm194_vm5, %v201_v62, %v200_v63 }
 0x160   :  { %203 = vst [vmem:[%s402_s4] sm:$0xff] %v202_v0 }
 0x161   :  { %208 = vsyncpa [#allocation3], 1 }
 0x162   :  { %209 = vsyncpa [#allocation5], 1 }
 0x163   :  { %210 = vsyncpa [#allocation8], 1 }

</bundles_post_ra>
